<compile_context>
chip_gen: v7x
topology: tpu7x:2x2x1
jax: 0.10.0
libtpu: 0.0.40
codegen_flags: <defaults>
</compile_context>

<pallas_src>
import functools

import jax
import jax.numpy as jnp
from jax.experimental import pallas as pl
from jax.experimental.pallas import tpu as pltpu


def _smoothed_ce_kernel(pred_ref, out_ref, m_i, l_i, sp_i,
                        *, ts, tv, vocab, ragged):
    """Streams one (ts, tv) logits tile; accumulates per-row logsumexp + sum."""
    k = pl.program_id(2)
    num_k = pl.num_programs(2)

    @pl.when(k == 0)
    def _init():
        m_i[...] = jnp.full_like(m_i, -jnp.inf)   # running row max
        l_i[...] = jnp.zeros_like(l_i)            # running row sum(exp(x - m))
        sp_i[...] = jnp.zeros_like(sp_i)          # running row sum(x)

    x = pred_ref[0].astype(jnp.float32)           # (ts, tv) logits tile

    def _accum(x_lse, x_sum):
        m_old = m_i[...]
        m_new = jnp.maximum(m_old, jnp.max(x_lse, axis=-1, keepdims=True))
        l_i[...] = l_i[...] * jnp.exp(m_old - m_new) + jnp.sum(
            jnp.exp(x_lse - m_new), axis=-1, keepdims=True)
        m_i[...] = m_new
        sp_i[...] = sp_i[...] + jnp.sum(x_sum, axis=-1, keepdims=True)

    if ragged:
        # Only the last vocab tile can contain out-of-bounds (undefined) columns.
        @pl.when(k < num_k - 1)
        def _full_tile():
            _accum(x, x)

        @pl.when(k == num_k - 1)
        def _last_tile():
            col = k * tv + jax.lax.broadcasted_iota(jnp.int32, (ts, tv), 1)
            valid = col < vocab
            _accum(jnp.where(valid, x, -jnp.inf), jnp.where(valid, x, 0.0))
    else:
        _accum(x, x)

    @pl.when(k == num_k - 1)
    def _finalize():
        lse = m_i[...] + jnp.log(l_i[...])                    # (ts, 1)
        smooth = lse - sp_i[...] * (1.0 / vocab)              # (ts, 1)
        # TODO(synk): a lane-dense (1, ts) output layout would avoid masked
        # vst stores, but needs an in-kernel column->row transpose; output
        # volume is O(B*S) floats so the win is negligible vs. the V-stream.
        out_ref[...] = smooth[None, :, :].astype(out_ref.dtype)


def _vmem_capacity_bytes() -> int:
    try:
        return int(pltpu.get_tpu_info().vmem_capacity_bytes)
    except Exception:
        return 64 * 1024 * 1024          # conservative (v7x-sized) fallback


def _tile_caps(vmem_cap: int):
    """Per-generation (row, vocab) tile caps."""
    if vmem_cap >= 100 * 1024 * 1024:    # v5e / v6e (128 MiB VMEM)
        return 512, 8192
    return 512, 4096                     # v7x (64 MiB VMEM) and fallback


def _pick_row_tile(S: int, align: int, cap: int) -> int:
    """Largest multiple of `align` that divides S and is <= cap, else full S."""
    if S <= cap:
        return S                         # full extent is always a legal block
    if S % align != 0:
        return S
    best = align
    t = align
    while t <= cap:
        if S % t == 0:
            best = t
        t += align
    return best


def _pick_vocab_tile(V: int, cap: int) -> int:
    """Full V if it fits (always legal); else the largest multiple of 128 <= cap
    preferring an exact divisor or <=2% wasted (masked) columns on the last tile."""
    if V <= cap:
        return V
    best_tv, best_pad = 128, (-V) % 128
    for tv in range(cap, 127, -128):
        pad = (-V) % tv
        if pad == 0:
            return tv                    # largest exact divisor
        if pad < best_pad:
            best_tv, best_pad = tv, pad
        if pad * 50 <= V:                # <= 2% waste: take the bigger tile
            return tv
    return best_tv


def smoothed_cross_entropy_loss(pred: jax.Array, target: jax.Array,
                                smoothing: float = 0.1, *,
                                row_tile: int | None = None,
                                vocab_tile: int | None = None) -> jax.Array:
    """pred: [B, S, V] float (f32 or bf16), target: [B, S] int. Returns scalar f32 loss.

    The kernel is HBM-bandwidth bound on all TPU generations; feeding bf16 `pred`
    halves the streamed bytes (accumulation is f32 in-kernel either way).
    """
    B, S, V = pred.shape
    target = target.astype(jnp.int32)

    vmem_cap = _vmem_capacity_bytes()
    row_cap, vocab_cap = _tile_caps(vmem_cap)
    row_align = 16 if pred.dtype == jnp.bfloat16 else 8

    ts = row_tile if row_tile is not None else _pick_row_tile(S, row_align, row_cap)
    tv = vocab_tile if vocab_tile is not None else _pick_vocab_tile(V, vocab_cap)

    # Megacore: keep B * (S/ts) >= 2 so both TensorCores get parallel work.
    if B * pl.cdiv(S, ts) < 2 and ts == S and S % (2 * row_align) == 0:
        ts = S // 2

    # Safety net: shrink the vocab tile if a full-row fallback would blow VMEM.
    itemsize = pred.dtype.itemsize
    max_block_bytes = int(0.35 * vmem_cap)
    while ts * tv * itemsize > max_block_bytes and tv > 128:
        tv = max(128, (tv // 2) // 128 * 128)

    assert ts == S or ts % 8 == 0, (S, ts)
    assert tv == V or tv % 128 == 0, (V, tv)

    num_k = pl.cdiv(V, tv)
    ragged = (num_k * tv != V)           # last vocab tile is masked in-kernel

    tile_bytes = ts * tv * itemsize
    vmem_limit = int(min(0.85 * vmem_cap,
                         max(32 * 2**20, 2 * tile_bytes + (8 << 20))))

    kernel = functools.partial(_smoothed_ce_kernel, ts=ts, tv=tv,
                               vocab=V, ragged=ragged)

    smooth = pl.pallas_call(
        kernel,
        out_shape=jax.ShapeDtypeStruct((B, S, 1), jnp.float32),
        grid_spec=pltpu.PrefetchScalarGridSpec(
            num_scalar_prefetch=0,
            grid=(B, pl.cdiv(S, ts), num_k),
            in_specs=[
                pl.BlockSpec((1, ts, tv), lambda b, j, k: (b, j, k)),   # logits tile
            ],
            out_specs=pl.BlockSpec((1, ts, 1), lambda b, j, k: (b, j, 0)),
            scratch_shapes=[
                pltpu.VMEM((ts, 1), jnp.float32),   # m_i
                pltpu.VMEM((ts, 1), jnp.float32),   # l_i
                pltpu.VMEM((ts, 1), jnp.float32),   # sp_i
            ],
        ),
        compiler_params=pltpu.CompilerParams(
            dimension_semantics=("parallel", "parallel", "arbitrary"),
            vmem_limit_bytes=vmem_limit,
        ),
    )(pred)[..., 0]                                        # (B, S) smooth term

    # nll term hoisted out of the kernel: only needs the O(B*V) slice pred[:, 0, :].
    pred0 = pred[:, 0, :].astype(jnp.float32)                       # (B, V)
    lse0 = jax.nn.logsumexp(pred0, axis=-1, keepdims=True)          # (B, 1)
    nll = lse0 - jnp.take_along_axis(pred0, target, axis=-1)        # (B, S)

    sm = jnp.float32(smoothing)
    return jnp.mean((1.0 - sm) * nll + sm * smooth)


def _reference_loss(pred, target, smoothing=0.1):
    """Pure-JAX reference reproducing the exact PyTorch forward."""
    logp = jax.nn.log_softmax(pred.astype(jnp.float32), axis=-1)    # [B, S, V]
    smooth = -jnp.mean(logp, axis=-1)                               # [B, S]
    nll = -jnp.take_along_axis(logp[:, 0, :], target, axis=-1)      # [B, S]
    loss = (1.0 - smoothing) * nll + smoothing * smooth
    return jnp.mean(loss)


if __name__ == "__main__":
    smoothing = 0.1
    key = jax.random.PRNGKey(0)
    k1, k2, k3, k4, k5, k6, k7, k8 = jax.random.split(key, 8)

    # 1) Primary small case (single vocab tile).
    B, S, V = 2, 8, 128
    pred = jax.random.normal(k1, (B, S, V), dtype=jnp.float32)
    target = jax.random.randint(k2, (B, S), 0, V, dtype=jnp.int32)
    loss = jax.block_until_ready(smoothed_cross_entropy_loss(pred, target, smoothing))
    ref = jax.block_until_ready(_reference_loss(pred, target, smoothing))
    assert jnp.allclose(loss, ref, rtol=1e-4, atol=1e-5), (loss, ref)

    # 2) Tiled / streaming-logsumexp path (multiple row + vocab tiles).
    B2, S2, V2 = 2, 32, 512
    pred2 = jax.random.normal(k3, (B2, S2, V2), dtype=jnp.float32)
    target2 = jax.random.randint(k4, (B2, S2), 0, V2, dtype=jnp.int32)
    loss2 = jax.block_until_ready(
        smoothed_cross_entropy_loss(pred2, target2, smoothing, row_tile=8, vocab_tile=128))
    ref2 = jax.block_until_ready(_reference_loss(pred2, target2, smoothing))
    assert jnp.allclose(loss2, ref2, rtol=1e-4, atol=1e-5), (loss2, ref2)

    # 3) Ragged vocab: V not a multiple of the vocab tile (masked last tile).
    B3, S3, V3 = 2, 8, 700
    pred3 = jax.random.normal(k5, (B3, S3, V3), dtype=jnp.float32)
    target3 = jax.random.randint(k6, (B3, S3), 0, V3, dtype=jnp.int32)
    loss3 = jax.block_until_ready(
        smoothed_cross_entropy_loss(pred3, target3, smoothing, vocab_tile=256))
    ref3 = jax.block_until_ready(_reference_loss(pred3, target3, smoothing))
    assert jnp.allclose(loss3, ref3, rtol=1e-4, atol=1e-5), (loss3, ref3)

    # 4) bf16 logits (halves streamed bytes; f32 accumulation in-kernel).
    B4, S4, V4 = 2, 16, 256
    pred4 = jax.random.normal(k7, (B4, S4, V4), dtype=jnp.bfloat16)
    target4 = jax.random.randint(k8, (B4, S4), 0, V4, dtype=jnp.int32)
    loss4 = jax.block_until_ready(smoothed_cross_entropy_loss(pred4, target4, smoothing))
    ref4 = jax.block_until_ready(_reference_loss(pred4, target4, smoothing))
    assert jnp.allclose(loss4, ref4, rtol=1e-3, atol=1e-4), (loss4, ref4)

    print("KERNEL_OK")
</pallas_src>

<mosaic_0001>
module attributes {stable_mosaic.version = 11 : i64} {
  func.func @_smoothed_ce_kernel(%arg0: i32, %arg1: i32, %arg2: i32, %arg3: memref<1x8x128xf32, #tpu.memory_space<vmem>>, %arg4: memref<1x8x1xf32, #tpu.memory_space<vmem>>, %arg5: memref<8x1xf32, #tpu.memory_space<vmem>>, %arg6: memref<8x1xf32, #tpu.memory_space<vmem>>, %arg7: memref<8x1xf32, #tpu.memory_space<vmem>>) attributes {dimension_semantics = [#tpu.dimension_semantics<parallel>, #tpu.dimension_semantics<parallel>, #tpu.dimension_semantics<arbitrary>], iteration_bounds = array<i64: 2, 1, 1>, scalar_prefetch = 0 : i64, scratch_operands = 3 : i64, tpu.core_type = #tpu.core_type<tc>, window_params = [{transform_indices = @transform_0, window_bounds = array<i64: 1, 8, 128>}, {transform_indices = @transform_1, window_bounds = array<i64: 1, 8, 1>}]} {
    %c0_i32 = arith.constant 0 : i32
    %0 = arith.cmpi eq, %arg2, %c0_i32 : i32
    %1 = arith.extui %0 : i1 to i32
    %c0_i32_0 = arith.constant 0 : i32
    %2 = arith.cmpi ne, %1, %c0_i32_0 : i32
    scf.if %2 {
      %cst_19 = arith.constant 0xFF800000 : f32
      %29 = vector.broadcast %cst_19 : f32 to vector<8x1xf32>
      %c0_20 = arith.constant 0 : index
      %c0_21 = arith.constant 0 : index
      %30 = vector.load %arg5[%c0_20, %c0_21] : memref<8x1xf32, #tpu.memory_space<vmem>>, vector<8x1xf32>
      tpu.vector_store %arg5[%c0_20, %c0_21], %29 {strides = array<i32>} : memref<8x1xf32, #tpu.memory_space<vmem>>, vector<8x1xf32>,
      %cst_22 = arith.constant 0.000000e+00 : f32
      %31 = vector.broadcast %cst_22 : f32 to vector<8x1xf32>
      %c0_23 = arith.constant 0 : index
      %c0_24 = arith.constant 0 : index
      %32 = vector.load %arg6[%c0_23, %c0_24] : memref<8x1xf32, #tpu.memory_space<vmem>>, vector<8x1xf32>
      tpu.vector_store %arg6[%c0_23, %c0_24], %31 {strides = array<i32>} : memref<8x1xf32, #tpu.memory_space<vmem>>, vector<8x1xf32>,
      %cst_25 = arith.constant 0.000000e+00 : f32
      %33 = vector.broadcast %cst_25 : f32 to vector<8x1xf32>
      %c0_26 = arith.constant 0 : index
      %c0_27 = arith.constant 0 : index
      %34 = vector.load %arg7[%c0_26, %c0_27] : memref<8x1xf32, #tpu.memory_space<vmem>>, vector<8x1xf32>
      tpu.vector_store %arg7[%c0_26, %c0_27], %33 {strides = array<i32>} : memref<8x1xf32, #tpu.memory_space<vmem>>, vector<8x1xf32>,
    } else {
    }
    %c0 = arith.constant 0 : index
    %c0_1 = arith.constant 0 : index
    %c0_2 = arith.constant 0 : index
    %3 = vector.load %arg3[%c0, %c0_1, %c0_2] : memref<1x8x128xf32, #tpu.memory_space<vmem>>, vector<1x8x128xf32>
    %4 = vector.shape_cast %3 : vector<1x8x128xf32> to vector<8x128xf32>
    %c0_3 = arith.constant 0 : index
    %c0_4 = arith.constant 0 : index
    %5 = vector.load %arg5[%c0_3, %c0_4] : memref<8x1xf32, #tpu.memory_space<vmem>>, vector<8x1xf32>
    %cst = arith.constant dense<0xFF800000> : vector<8xf32>
    %6 = vector.multi_reduction <maximumf>, %4, %cst [1] : vector<8x128xf32> to vector<8xf32>
    %7 = vector.shape_cast %6 : vector<8xf32> to vector<8x1xf32>
    %8 = arith.maximumf %5, %7 : vector<8x1xf32>
    %c0_5 = arith.constant 0 : index
    %c0_6 = arith.constant 0 : index
    %9 = vector.load %arg6[%c0_5, %c0_6] : memref<8x1xf32, #tpu.memory_space<vmem>>, vector<8x1xf32>
    %10 = arith.subf %5, %8 : vector<8x1xf32>
    %11 = math.exp %10 : vector<8x1xf32>
    %12 = arith.mulf %9, %11 : vector<8x1xf32>
    %13 = vector.broadcast %8 : vector<8x1xf32> to vector<8x128xf32>
    %14 = arith.subf %4, %13 : vector<8x128xf32>
    %15 = math.exp %14 : vector<8x128xf32>
    %cst_7 = arith.constant dense<0.000000e+00> : vector<8xf32>
    %16 = vector.multi_reduction <add>, %15, %cst_7 [1] : vector<8x128xf32> to vector<8xf32>
    %17 = vector.shape_cast %16 : vector<8xf32> to vector<8x1xf32>
    %18 = arith.addf %12, %17 : vector<8x1xf32>
    %c0_8 = arith.constant 0 : index
    %c0_9 = arith.constant 0 : index
    %19 = vector.load %arg6[%c0_8, %c0_9] : memref<8x1xf32, #tpu.memory_space<vmem>>, vector<8x1xf32>
    tpu.vector_store %arg6[%c0_8, %c0_9], %18 {strides = array<i32>} : memref<8x1xf32, #tpu.memory_space<vmem>>, vector<8x1xf32>,
    %c0_10 = arith.constant 0 : index
    %c0_11 = arith.constant 0 : index
    %20 = vector.load %arg5[%c0_10, %c0_11] : memref<8x1xf32, #tpu.memory_space<vmem>>, vector<8x1xf32>
    tpu.vector_store %arg5[%c0_10, %c0_11], %8 {strides = array<i32>} : memref<8x1xf32, #tpu.memory_space<vmem>>, vector<8x1xf32>,
    %c0_12 = arith.constant 0 : index
    %c0_13 = arith.constant 0 : index
    %21 = vector.load %arg7[%c0_12, %c0_13] : memref<8x1xf32, #tpu.memory_space<vmem>>, vector<8x1xf32>
    %cst_14 = arith.constant dense<0.000000e+00> : vector<8xf32>
    %22 = vector.multi_reduction <add>, %4, %cst_14 [1] : vector<8x128xf32> to vector<8xf32>
    %23 = vector.shape_cast %22 : vector<8xf32> to vector<8x1xf32>
    %24 = arith.addf %21, %23 : vector<8x1xf32>
    %c0_15 = arith.constant 0 : index
    %c0_16 = arith.constant 0 : index
    %25 = vector.load %arg7[%c0_15, %c0_16] : memref<8x1xf32, #tpu.memory_space<vmem>>, vector<8x1xf32>
    tpu.vector_store %arg7[%c0_15, %c0_16], %24 {strides = array<i32>} : memref<8x1xf32, #tpu.memory_space<vmem>>, vector<8x1xf32>,
    %c0_i32_17 = arith.constant 0 : i32
    %26 = arith.cmpi eq, %arg2, %c0_i32_17 : i32
    %27 = arith.extui %26 : i1 to i32
    %c0_i32_18 = arith.constant 0 : i32
    %28 = arith.cmpi ne, %27, %c0_i32_18 : i32
    scf.if %28 {
      %c0_19 = arith.constant 0 : index
      %c0_20 = arith.constant 0 : index
      %29 = vector.load %arg5[%c0_19, %c0_20] : memref<8x1xf32, #tpu.memory_space<vmem>>, vector<8x1xf32>
      %c0_21 = arith.constant 0 : index
      %c0_22 = arith.constant 0 : index
      %30 = vector.load %arg6[%c0_21, %c0_22] : memref<8x1xf32, #tpu.memory_space<vmem>>, vector<8x1xf32>
      %31 = math.log %30 : vector<8x1xf32>
      %32 = arith.addf %29, %31 : vector<8x1xf32>
      %c0_23 = arith.constant 0 : index
      %c0_24 = arith.constant 0 : index
      %33 = vector.load %arg7[%c0_23, %c0_24] : memref<8x1xf32, #tpu.memory_space<vmem>>, vector<8x1xf32>
      %cst_25 = arith.constant 7.812500e-03 : f32
      %34 = vector.broadcast %cst_25 : f32 to vector<8x1xf32>
      %35 = arith.mulf %33, %34 : vector<8x1xf32>
      %36 = arith.subf %32, %35 : vector<8x1xf32>
      %37 = vector.shape_cast %36 : vector<8x1xf32> to vector<1x8x1xf32>
      %c0_26 = arith.constant 0 : index
      %c0_27 = arith.constant 0 : index
      %c0_28 = arith.constant 0 : index
      %38 = vector.load %arg4[%c0_26, %c0_27, %c0_28] : memref<1x8x1xf32, #tpu.memory_space<vmem>>, vector<1x8x1xf32>
      tpu.vector_store %arg4[%c0_26, %c0_27, %c0_28], %37 {strides = array<i32>} : memref<1x8x1xf32, #tpu.memory_space<vmem>>, vector<1x8x1xf32>,
    } else {
    }
    return
  }
  func.func @transform_0(%arg0: i32, %arg1: i32, %arg2: i32) -> (i32, i32, i32) {
    %c0_i32 = arith.constant 0 : i32
    return %arg0, %arg1, %arg2 : i32, i32, i32
  }
  func.func @transform_1(%arg0: i32, %arg1: i32, %arg2: i32) -> (i32, i32, i32) {
    %c0_i32 = arith.constant 0 : i32
    %c0_i32_0 = arith.constant 0 : i32
    return %arg0, %arg1, %c0_i32 : i32, i32, i32
  }
}

</mosaic_0001>

<bundles_post_ra>
// kernel: tpu_custom_call.1
= control target key start
LH: loop header
LB: loop body
LE: loop exit
PB: predicated region body
PF: predicated region fallthrough
CT: control target
= control target key end

     0   :  { %6 = vsyncpa [#allocation6], 0  ;;  %s606_s0 = inlined_call_operand.hbm [shape: f32[2,8,128], index: 0, kind: input, shape index: {}]   ;;  %s607_s1 = inlined_call_operand.vmem [shape: f32[2,8,1], index: 1, kind: output, shape index: {}]  }
   0x1   :  { %8 = vsyncpa [#allocation6 + $0x1], 0  ;;  %s474_s6 = smov 0   ;;  %s476_s7 = smov 0  }
   0x2   :  { %s478_s8 = smov 0   ;;  %s480_s9 = smov 0  }
   0x3   :  { %s482_s10 = smov 0   ;;  %s484_s11 = smov 0  }
   0x4 LB: > { %s302_s12 = sadd.s32 4294967295, %s458_s11   ;;  %s33_s13 = sadd.s32 1, %s454_s10  ;;  %s458_s11 = sphi %s484_s11, %s14_s11   ;;  %s454_s10 = sphi %s482_s10, %s617_s10   ;;  %s450_s9 = sphi %s480_s9, %s616_s9   ;;  %s446_s8 = sphi %s478_s8, %s615_s8   ;;  %s442_s7 = sphi %s476_s7, %s614_s7   ;;  %s438_s6 = sphi %s474_s6, %s613_s6  }
   0x5   : > { %p35_p0 = scmp.ge.s32.totalorder %s33_s13, 2  ;;  %s44_s14 = sadd.s32 1, %s446_s8 }
   0x6   : > { %p51_p1 = scmp.ne.s32.totalorder %s446_s8, %s442_s7  ;;  %p52_p2 = scmp.eq.s32.totalorder %s458_s11, 0 }
   0x7   : > { %s619_s13 = smov (%p35_p0, %s33_s13), 0  ;;  %p57_p4 = scmp.ne.s32.totalorder %s442_s7, %s438_s6 }
   0x8   : > { %p510_p3 = por %p52_p2, %p51_p1  ;;  %s37_s16 = ssub.s32 %s454_s10, %s619_s13 }
   0x9   : > { %p58_p5 = scmp.eq.s32.totalorder %s302_s12, 0  ;;  %p42_p6 = scmp.eq.s32.totalorder %s37_s16, 0 }
   0xa   : > { %p319_p8 = scmp.lt.s32.totalorder %s458_s11, 2  ;;  %s109_s19 = sand.u32 1, %s446_s8  }
   0xb   : > { %p517_p7 = por %p58_p5, %p57_p4  ;;  %s307_s20 = sshll.u32 %s454_s10, 7 }
   0xc   : > { %s523_s18 = scalar_select %p42_p6, %s446_s8, %s44_s14  }
   0xd   : > { %s306_s21 = sshll.u32 %s109_s19, 3  ;;  %s530_s24 = scalar_lea.hbm %s606_s0, %s307_s20 }
   0xe   : > { %s113_s25 = scalar_lea.vmem [#allocation5], %s306_s21  ;;  %p534_p9 = pnand %p319_p8, %p510_p3 }
   0xf   : > { %s122_s26 = sshll.u32 %s113_s25, 4  ;;  %s110_s28 = scalar_lea.sflag [#allocation6], %s109_s19  ;;  %s538_s26 = int_to_ptr.vmem [resolvable:$true] %s122_s26 }
  0x10   : > { %s378_s29 = scalar_lea.hbm %s530_s24, 128  ;;  %p380_p13 = pneg %p534_p9 }
  0x11   : > { %p379_p12 = scmp.ne.s32.totalorder %s530_s24, %s378_s29  ;;  %s383_s3 = scalar_lea.hbm %s606_s0, 256 }
  0x12   : > { %p384_p2 = scmp.lt.u32.totalorder %s530_s24, %s606_s0  ;;  %p385_p3 = scmp.lt.u32.totalorder %s383_s3, %s378_s29 }
  0x13   : > { %p381_p0 = pnand %p380_p13, %p379_p12  ;;  %p387_p5 = scmp.lt.u32.totalorder %s378_s29, %s530_s24 }
  0x14   : > { %p386_p4 = por %p385_p3, %p384_p2 }
  0x15   : > { %p382_p1 = pneg %p381_p0 }
  0x16   : > { %p388_p6 = por %p387_p5, %p386_p4 }
  0x18   : > { %p389_p8 = pnand %p388_p6, %p382_p1 }
  0x1a   : > { %392 = shalt.err (!%p389_p8)
}
  0x1b   : > { %s393_s6 = scalar_lea.vmem %s538_s26, 128  ;;  %s460_s12 = smov [#allocation5]  }
  0x1c   : > { %p394_p12 = scmp.ne.s32.totalorder %s538_s26, %s393_s6  ;;  %s398_s14 = sshll.u32 %s460_s12, 4  ;;  %s399_s14 = int_to_ptr.vmem [resolvable:$false] %s398_s14 }
  0x1d   : > { %s400_s15 = scalar_lea.vmem %s399_s14, 256  ;;  %p401_p11 = scmp.lt.s32.totalorder %s538_s26, %s399_s14 }
  0x1e   : > { %p396_p0 = pnand %p394_p12, %p380_p13  ;;  %p402_p2 = scmp.lt.s32.totalorder %s400_s15, %s393_s6 }
  0x20   : > { %p397_p10 = pneg %p396_p0  ;;  %p403_p3 = por %p402_p2, %p401_p11 }
  0x22   : > { %p404_p4 = pnand %p403_p3, %p397_p10 }
  0x24   : > { %407 = shalt.err (!%p404_p4)
}
  0x25   : > { %318 = dma.hbm_to_vmem [thread:$0]  (!%p534_p9), %s530_s24, 128, %s538_s26, %s110_s28  }
  0x26   : > { %p611_p1 = scmp.lt.s32.totalorder %s458_s11, 3  ;;  %p612_p5 = scmp.ge.s32.totalorder %s458_s11, 1 }
  0x28   : > { %p128_p13 = pnand %p612_p5, %p611_p1 }
  0x29   : > { %s133_s16 = sand.u32 (!%p128_p13), 1, %s442_s7  }
  0x2a   : > { %131 = sbr.rel (%p128_p13) target bundleno = 508 (0x1fc), region = 24  ;;  %s309_s19 = sshll.u32 (!%p128_p13), %s133_s16, 3 }
  0x2b   : > { %s134_s20 = scalar_lea.sflag (!%p128_p13), [#allocation6], %s133_s16  ;;  %s137_s21 = scalar_lea.vmem (!%p128_p13), [#allocation5], %s309_s19 }
  0x31   : > { %433 = dma.done.wait (%p517_p7), %s134_s20, 128  }
  0x32   : > { %435 = vsyncadd (%p517_p7), %s134_s20, 4294967168  ;;  %vm169_vm0 = vcmask 7168   ;;  %v461_v0 = vmov -inf   ;;  %v173_v1 = vld [vmem:[%s137_s21] sm:$0xff]  ;;  %v462_v2 = vmov 0   ;;  %v463_v3 = vmov 0.0  }
  0x33   : > { %170 = vst.msk [vmem:[#allocation2] sm:$0xff] %vm169_vm0, %v461_v0  ;;  %175 = vmax.xlane.f32.xlu0 %v173_v1  ;;  %171 = vst.msk [vmem:[#allocation3] sm:$0xff] %vm169_vm0, %v463_v3  ;;  %p158_p7 = scmp.lt.s32.totalorder %s450_s9, 1 }
  0x34   : > { %371 = vset.pattern.permute.xlu0 %v462_v2  ;;  %172 = vst.msk [vmem:[#allocation4] sm:$0xff] %vm169_vm0, %v463_v3 }
  0x35   : > { %s621_s9 = smov (!%p158_p7, %s450_s9), 1 }
  0x36   : > { %s310_s17 = sshll.u32 %s621_s9, 3 }
  0x37   : > { %s164_s24 = scalar_lea.vmem %s607_s1, %s310_s17 }
  0x3a   : > { %v174_v4 = vld [vmem:[#allocation2] sm:$0xff]  ;;  %v178_v14 = vld [vmem:[#allocation3] sm:$0xff] }
  0x3b   : > { %v197_v18 = vld [vmem:[#allocation4] sm:$0xff] }
  0xc0   : > { %v176_v5 = vpop.xlane.xlu0 %175 }
  0xc1   : > { %v177_v6 = vmax.f32 %v174_v4, %v176_v5 }
  0xc3   : > { %v179_v7 = vsub.f32 %v174_v4, %v177_v6  ;;  %196 = vst.msk [vmem:[#allocation2] sm:$0xff] %vm169_vm0, %v177_v6  ;;  %185 = vperm.xlu0 %371, %v177_v6  }
  0xc5   : > { %v180_v12 = vmul.f32 1.442695, %v179_v7 }
  0xca   : > { %v205_v26 = vld [vmem:[#allocation2] sm:$0xff] }
 0x142   : > { %v186_v8 = vpop.permute.xlu0 %185 }
 0x143   : > { %v188_v9 = vsub.f32 %v173_v1, %v186_v8 }
 0x145   : > { %v189_v10 = vmul.f32 1.442695, %v188_v9 }
 0x147   : > { %372 = vpow2.f32 %v189_v10 }
 0x148   : > { %374 = vpow2.f32 %v180_v12 }
 0x151   : > { %v373_v11 = vpop.eup %372 }
 0x152   : > { %191 = vadd.xlane.f32.xlu1 %v373_v11  ;;  %v375_v13 = vpop.eup %374 }
 0x153   : > { %v182_v15 = vmul.f32 %v375_v13, %v178_v14 }
 0x156   : > { %198 = vadd.xlane.f32.xlu1 %v173_v1 }
 0x1df   : > { %v192_v16 = vpop.xlane.xlu1 %191 }
 0x1e0   : > { %v193_v17 = vadd.f32 %v192_v16, %v182_v15 }
 0x1e2   : > { %195 = vst.msk [vmem:[#allocation3] sm:$0xff] %vm169_vm0, %v193_v17 }
 0x1e3   : > { %v199_v19 = vpop.xlane.xlu1 %198 }
 0x1e4   : > { %v200_v20 = vadd.f32 %v199_v19, %v197_v18 }
 0x1e6   : > { %201 = vst.msk [vmem:[#allocation4] sm:$0xff] %vm169_vm0, %v200_v20 }
 0x1e9   : > { %v206_v21 = vld [vmem:[#allocation3] sm:$0xff] }
 0x1ea   : > { %376 = vlog2.f32 %v206_v21 }
 0x1ed   : > { %v210_v22 = vld [vmem:[#allocation4] sm:$0xff] }
 0x1ee   : > { %v211_v25 = vmul.f32 0.0078125, %v210_v22 }
 0x1f4   : > { %v377_v23 = vpop.eup %376 }
 0x1f5   : > { %v208_v24 = vmul.f32 0.6931472, %v377_v23 }
 0x1f7   : > { %v209_v27 = vadd.f32 %v208_v24, %v205_v26 }
 0x1f9   : > { %v212_v28 = vsub.f32 %v209_v27, %v211_v25 }
 0x1fb   : > { %213 = vst.msk [vmem:[%s164_s24] sm:$0xff] %vm169_vm0, %v212_v28 }
 0x1fc PF: > { %s14_s11 = sadd.s32 1, %s458_s11   ;;  %s613_s6 = smov %s442_s7 }
 0x1fd   : > { %p11_p9 = scmp.ge.s32.totalorder %s14_s11, 4   ;;  %s614_s7 = smov %s446_s8 }
 0x1fe   : > { %s615_s8 = smov %s523_s18  ;;  %s616_s9 = smov %s454_s10 }
 0x1ff   : > { %s617_s10 = smov %s619_s13  ;;  %13 = sbr.rel (!%p11_p9) target bundleno = 4 (0x4), region = 72 }
 0x206   :  { %239 = vsyncpa [#allocation6], 1 }
 0x207   :  { %241 = vsyncpa [#allocation6 + $0x1], 1 }

</bundles_post_ra>
